<compile_context>
chip_gen: v7x
topology: tpu7x:2x2x1
jax: 0.10.0
libtpu: 0.0.40
codegen_flags: <defaults>
</compile_context>

<pallas_src>
import functools

import numpy as np
import jax
import jax.numpy as jnp
from jax.experimental import pallas as pl
from jax.experimental.pallas import tpu as pltpu


# ----------------------------- kernels ------------------------------------- #

def _pool_sum_kernel(x_ref, s_ref):
    # x_ref: (1, NH, Ch, T)  one batch row, one spatial tile (zero padded past HW)
    # s_ref: (1, NH, Ch, 1)  running per-channel sums, resident across spatial tiles
    @pl.when(pl.program_id(1) == 0)
    def _init():
        s_ref[...] = jnp.zeros_like(s_ref)

    s_ref[...] += jnp.sum(x_ref[...].astype(jnp.float32), axis=-1, keepdims=True)


def _gate_apply_kernel(w_ref, b_ref, y_ref, x_ref, o_ref):
    # w_ref: SMEM (NH, k_max) f32  conv taps, centered per head, pre-scaled by 1/HW
    # b_ref: SMEM (NH,)       f32  conv bias per head
    # y_ref: VMEM (1, 1, 1, Ch + 2*p_max) f32  pooled channel sums, zero-padded ends
    # x_ref, o_ref: (1, 1, Ch, T)  one (batch, head) spatial tile
    head = pl.program_id(1)
    ch = x_ref.shape[2]
    k_max = w_ref.shape[1]

    y = y_ref[...]                                   # (1, 1, 1, Ch + 2*p_max)
    g = jnp.zeros((1, ch), jnp.float32) + b_ref[head]
    for t in range(k_max):                           # static unroll: k shifted FMAs
        g = g + w_ref[head, t] * y[0, 0, :, t:t + ch]
    gate = jax.nn.sigmoid(g)                         # (1, Ch)

    x = x_ref[...].astype(jnp.float32)               # (1, 1, Ch, T)
    o_ref[...] = (x * gate[None, :, :, None]).astype(o_ref.dtype)


# ----------------------------- wrapper -------------------------------------- #

def _choose_spatial_tile(hw: int, max_tile: int):
    """Pad HW to a multiple of 128 and pick the largest lane-dense tile <= max_tile
    that divides the padded extent (falls back to 128)."""
    lane = 128
    hw128 = -(-hw // lane) * lane
    max_tile = max(lane, (max_tile // lane) * lane)
    tile = lane
    for cand in range(min(max_tile, hw128), lane - 1, -lane):
        if hw128 % cand == 0:
            tile = cand
            break
    return hw128, tile


@functools.partial(jax.jit, static_argnames=("num_heads", "max_tile"))
def multi_scale_attention(x, conv_weights, conv_biases, num_heads, max_tile=2048):
    """x: [B, C, H, W]. conv_weights[i]: [k_i] (k_i = 2*i+3); conv_biases[i]: scalar."""
    B, C, H, W = x.shape
    assert C % num_heads == 0, "channels must be divisible by num_heads"
    Ch = C // num_heads
    HW = H * W

    HWp, T = _choose_spatial_tile(HW, max_tile)
    S = HWp // T

    # Head-major 4D view; zero-pad spatial to a lane-dense multiple of the tile.
    x4 = x.reshape(B, num_heads, Ch, HW)
    if HWp != HW:
        x4 = jnp.pad(x4, ((0, 0), (0, 0), (0, 0), (0, HWp - HW)))

    # ---- pass 1: per-channel spatial sums (AdaptiveAvgPool2d numerator) ----
    sums = pl.pallas_call(
        _pool_sum_kernel,
        out_shape=jax.ShapeDtypeStruct((B, num_heads, Ch, 1), jnp.float32),
        grid=(B, S),
        in_specs=[pl.BlockSpec((1, num_heads, Ch, T), lambda b, s: (b, 0, 0, s))],
        out_specs=pl.BlockSpec((1, num_heads, Ch, 1), lambda b, s: (b, 0, 0, 0)),
        compiler_params=pltpu.CompilerParams(
            dimension_semantics=("parallel", "arbitrary")),
    )(x4)

    # ---- host glue on tiny arrays: taps centered in k_max window, 1/HW folded in ----
    k_sizes = [int(w.shape[0]) for w in conv_weights]
    k_max = max(k_sizes)
    p_max = (k_max - 1) // 2
    rows = []
    for i in range(num_heads):
        k = k_sizes[i]
        off = p_max - (k - 1) // 2
        rows.append(jnp.zeros((k_max,), jnp.float32)
                    .at[off:off + k].set(conv_weights[i].astype(jnp.float32)))
    w_taps = jnp.stack(rows) * (1.0 / HW)                       # (NH, k_max)
    b_taps = jnp.stack([jnp.reshape(b, ()).astype(jnp.float32)
                        for b in conv_biases])                  # (NH,)

    yp = jnp.swapaxes(sums, -1, -2)                             # (B, NH, 1, Ch)
    yp = jnp.pad(yp, ((0, 0), (0, 0), (0, 0), (p_max, p_max)))  # (B, NH, 1, Ch+2p)
    chp = Ch + 2 * p_max

    # ---- pass 2: gate (k-tap conv + sigmoid) and apply, tiled over spatial ----
    out4 = pl.pallas_call(
        _gate_apply_kernel,
        out_shape=jax.ShapeDtypeStruct((B, num_heads, Ch, HWp), x.dtype),
        grid=(B, num_heads, S),
        in_specs=[
            pl.BlockSpec(memory_space=pltpu.MemorySpace.SMEM),              # taps
            pl.BlockSpec(memory_space=pltpu.MemorySpace.SMEM),              # bias
            pl.BlockSpec((1, 1, 1, chp), lambda b, h, s: (b, h, 0, 0)),     # pooled
            pl.BlockSpec((1, 1, Ch, T), lambda b, h, s: (b, h, 0, s)),      # x tile
        ],
        out_specs=pl.BlockSpec((1, 1, Ch, T), lambda b, h, s: (b, h, 0, s)),
        compiler_params=pltpu.CompilerParams(
            dimension_semantics=("parallel", "parallel", "parallel")),
        input_output_aliases={3: 0},    # out aliases the padded/reshaped x buffer
    )(w_taps, b_taps, yp, x4)

    out = out4 if HWp == HW else out4[..., :HW]
    return out.reshape(B, C, H, W)


# ----------------------------- reference ------------------------------------ #

def reference(x, conv_weights, conv_biases, num_heads):
    """Pure-JAX reference mirroring the PyTorch forward."""
    B, C, H, W = x.shape
    Ch = C // num_heads
    outs = []
    for i in range(num_heads):
        head = x[:, i * Ch:(i + 1) * Ch]
        y = jnp.mean(head, axis=(2, 3))                      # (B, Ch)
        w = conv_weights[i]
        k = w.shape[0]
        P = (k - 1) // 2
        ypad = jnp.pad(y, ((0, 0), (P, P)))
        g = jnp.zeros_like(y) + conv_biases[i]
        for t in range(k):
            g = g + w[t] * ypad[:, t:t + Ch]
        gate = jax.nn.sigmoid(g)
        outs.append(head * gate[:, :, None, None])
    return jnp.concatenate(outs, axis=1)


# ----------------------------- test ----------------------------------------- #

if __name__ == "__main__":
    key = jax.random.PRNGKey(0)

    # Primary test: matches the original module shapes.
    num_heads = 2
    use_bias = True
    B, C, H, W = 2, 16, 16, 16
    k_sizes = [2 * i + 3 for i in range(num_heads)]

    keys = jax.random.split(key, 1 + 2 * num_heads)
    x = jax.random.normal(keys[0], (B, C, H, W), dtype=jnp.float32)
    conv_weights = [
        0.3 * jax.random.normal(keys[1 + i], (k_sizes[i],), dtype=jnp.float32)
        for i in range(num_heads)
    ]
    conv_biases = [
        (0.1 * jax.random.normal(keys[1 + num_heads + i], (), dtype=jnp.float32)
         if use_bias else jnp.zeros((), dtype=jnp.float32))
        for i in range(num_heads)
    ]

    out = multi_scale_attention(x, conv_weights, conv_biases, num_heads=num_heads)
    out = jax.block_until_ready(out)
    ref = reference(x, conv_weights, conv_biases, num_heads)
    assert out.shape == (B, C, H, W)
    np.testing.assert_allclose(np.asarray(out), np.asarray(ref), rtol=1e-5, atol=1e-5)

    # Secondary check: exercises spatial zero-padding (HW not a multiple of 128),
    # multi-tile spatial reduction, Ch not a multiple of 8, and 3 heads (k=3,5,7).
    num_heads2 = 3
    B2, C2, H2, W2 = 2, 12, 13, 13
    k_sizes2 = [2 * i + 3 for i in range(num_heads2)]
    keys2 = jax.random.split(jax.random.PRNGKey(1), 1 + 2 * num_heads2)
    x2 = jax.random.normal(keys2[0], (B2, C2, H2, W2), dtype=jnp.float32)
    w2 = [0.3 * jax.random.normal(keys2[1 + i], (k_sizes2[i],), dtype=jnp.float32)
          for i in range(num_heads2)]
    b2 = [0.1 * jax.random.normal(keys2[1 + num_heads2 + i], (), dtype=jnp.float32)
          for i in range(num_heads2)]
    out2 = multi_scale_attention(x2, w2, b2, num_heads=num_heads2, max_tile=128)
    out2 = jax.block_until_ready(out2)
    np.testing.assert_allclose(np.asarray(out2),
                               np.asarray(reference(x2, w2, b2, num_heads2)),
                               rtol=1e-5, atol=1e-5)

    print("KERNEL_OK")
</pallas_src>

<mosaic_0001>
module attributes {stable_mosaic.version = 11 : i64} {
  func.func @_pool_sum_kernel(%arg0: i32, %arg1: i32, %arg2: memref<1x2x8x256xf32, #tpu.memory_space<vmem>>, %arg3: memref<1x2x8x1xf32, #tpu.memory_space<vmem>>) attributes {dimension_semantics = [#tpu.dimension_semantics<parallel>, #tpu.dimension_semantics<arbitrary>], iteration_bounds = array<i64: 2, 1>, scalar_prefetch = 0 : i64, scratch_operands = 0 : i64, tpu.core_type = #tpu.core_type<tc>, window_params = [{transform_indices = @transform_0, window_bounds = array<i64: 1, 2, 8, 256>}, {transform_indices = @transform_1, window_bounds = array<i64: 1, 2, 8, 1>}]} {
    %c0_i32 = arith.constant 0 : i32
    %0 = arith.cmpi eq, %arg1, %c0_i32 : i32
    %1 = arith.extui %0 : i1 to i32
    %c0_i32_0 = arith.constant 0 : i32
    %2 = arith.cmpi ne, %1, %c0_i32_0 : i32
    scf.if %2 {
      %cst_12 = arith.constant 0.000000e+00 : f32
      %9 = vector.broadcast %cst_12 : f32 to vector<1x2x8x1xf32>
      %c0_13 = arith.constant 0 : index
      %c0_14 = arith.constant 0 : index
      %c0_15 = arith.constant 0 : index
      %c0_16 = arith.constant 0 : index
      %10 = vector.load %arg3[%c0_13, %c0_14, %c0_15, %c0_16] : memref<1x2x8x1xf32, #tpu.memory_space<vmem>>, vector<1x2x8x1xf32>
      tpu.vector_store %arg3[%c0_13, %c0_14, %c0_15, %c0_16], %9 {strides = array<i32>} : memref<1x2x8x1xf32, #tpu.memory_space<vmem>>, vector<1x2x8x1xf32>,
    } else {
    }
    %c0 = arith.constant 0 : index
    %c0_1 = arith.constant 0 : index
    %c0_2 = arith.constant 0 : index
    %c0_3 = arith.constant 0 : index
    %3 = vector.load %arg3[%c0, %c0_1, %c0_2, %c0_3] : memref<1x2x8x1xf32, #tpu.memory_space<vmem>>, vector<1x2x8x1xf32>
    %c0_4 = arith.constant 0 : index
    %c0_5 = arith.constant 0 : index
    %c0_6 = arith.constant 0 : index
    %c0_7 = arith.constant 0 : index
    %4 = vector.load %arg2[%c0_4, %c0_5, %c0_6, %c0_7] : memref<1x2x8x256xf32, #tpu.memory_space<vmem>>, vector<1x2x8x256xf32>
    %cst = arith.constant dense<0.000000e+00> : vector<1x2x8xf32>
    %5 = vector.multi_reduction <add>, %4, %cst [3] : vector<1x2x8x256xf32> to vector<1x2x8xf32>
    %6 = vector.shape_cast %5 : vector<1x2x8xf32> to vector<1x2x8x1xf32>
    %7 = arith.addf %3, %6 : vector<1x2x8x1xf32>
    %c0_8 = arith.constant 0 : index
    %c0_9 = arith.constant 0 : index
    %c0_10 = arith.constant 0 : index
    %c0_11 = arith.constant 0 : index
    %8 = vector.load %arg3[%c0_8, %c0_9, %c0_10, %c0_11] : memref<1x2x8x1xf32, #tpu.memory_space<vmem>>, vector<1x2x8x1xf32>
    tpu.vector_store %arg3[%c0_8, %c0_9, %c0_10, %c0_11], %7 {strides = array<i32>} : memref<1x2x8x1xf32, #tpu.memory_space<vmem>>, vector<1x2x8x1xf32>,
    return
  }
  func.func @transform_0(%arg0: i32, %arg1: i32) -> (i32, i32, i32, i32) {
    %c0_i32 = arith.constant 0 : i32
    %c0_i32_0 = arith.constant 0 : i32
    %c0_i32_1 = arith.constant 0 : i32
    return %arg0, %c0_i32, %c0_i32_0, %arg1 : i32, i32, i32, i32
  }
  func.func @transform_1(%arg0: i32, %arg1: i32) -> (i32, i32, i32, i32) {
    %c0_i32 = arith.constant 0 : i32
    %c0_i32_0 = arith.constant 0 : i32
    %c0_i32_1 = arith.constant 0 : i32
    %c0_i32_2 = arith.constant 0 : i32
    return %arg0, %c0_i32, %c0_i32_0, %c0_i32_1 : i32, i32, i32, i32
  }
}

module attributes {stable_mosaic.version = 11 : i64} {
  func.func @_gate_apply_kernel(%arg0: i32, %arg1: i32, %arg2: i32, %arg3: memref<2x5xf32, #tpu.memory_space<smem>>, %arg4: memref<2xf32, #tpu.memory_space<smem>>, %arg5: memref<1x1x1x12xf32, #tpu.memory_space<vmem>>, %arg6: memref<1x1x8x256xf32, #tpu.memory_space<vmem>>, %arg7: memref<1x1x8x256xf32, #tpu.memory_space<vmem>>) attributes {dimension_semantics = [#tpu.dimension_semantics<parallel>, #tpu.dimension_semantics<parallel>, #tpu.dimension_semantics<parallel>], iteration_bounds = array<i64: 2, 2, 1>, scalar_prefetch = 0 : i64, scratch_operands = 0 : i64, tpu.core_type = #tpu.core_type<tc>, window_params = [{transform_indices = @transform_0, window_bounds = array<i64: 2, 5>}, {transform_indices = @transform_1, window_bounds = array<i64: 2>}, {transform_indices = @transform_2, window_bounds = array<i64: 1, 1, 1, 12>}, {transform_indices = @transform_3, window_bounds = array<i64: 1, 1, 8, 256>}, {transform_indices = @transform_4, window_bounds = array<i64: 1, 1, 8, 256>}]} {
    %c0 = arith.constant 0 : index
    %c0_0 = arith.constant 0 : index
    %c0_1 = arith.constant 0 : index
    %c0_2 = arith.constant 0 : index
    %0 = vector.load %arg5[%c0, %c0_0, %c0_1, %c0_2] : memref<1x1x1x12xf32, #tpu.memory_space<vmem>>, vector<1x1x1x12xf32>
    %cst = arith.constant 0.000000e+00 : f32
    %1 = vector.broadcast %cst : f32 to vector<1x8xf32>
    %2 = arith.index_cast %arg1 : i32 to index
    %3 = memref.load %arg4[%2] : memref<2xf32, #tpu.memory_space<smem>>
    %4 = vector.broadcast %3 : f32 to vector<1x8xf32>
    %5 = arith.addf %1, %4 : vector<1x8xf32>
    %6 = arith.index_cast %arg1 : i32 to index
    %c0_3 = arith.constant 0 : index
    %7 = memref.load %arg3[%6, %c0_3] : memref<2x5xf32, #tpu.memory_space<smem>>
    %8 = vector.extract_strided_slice %0 {offsets = [0, 0, 0, 0], sizes = [1, 1, 1, 8], strides = [1, 1, 1, 1]} : vector<1x1x1x12xf32> to vector<1x1x1x8xf32>
    %9 = vector.shape_cast %8 : vector<1x1x1x8xf32> to vector<1x8xf32>
    %10 = vector.broadcast %7 : f32 to vector<1x8xf32>
    %11 = arith.mulf %10, %9 : vector<1x8xf32>
    %12 = arith.addf %5, %11 : vector<1x8xf32>
    %13 = arith.index_cast %arg1 : i32 to index
    %c1 = arith.constant 1 : index
    %14 = memref.load %arg3[%13, %c1] : memref<2x5xf32, #tpu.memory_space<smem>>
    %15 = vector.extract_strided_slice %0 {offsets = [0, 0, 0, 1], sizes = [1, 1, 1, 8], strides = [1, 1, 1, 1]} : vector<1x1x1x12xf32> to vector<1x1x1x8xf32>
    %16 = vector.shape_cast %15 : vector<1x1x1x8xf32> to vector<1x8xf32>
    %17 = vector.broadcast %14 : f32 to vector<1x8xf32>
    %18 = arith.mulf %17, %16 : vector<1x8xf32>
    %19 = arith.addf %12, %18 : vector<1x8xf32>
    %20 = arith.index_cast %arg1 : i32 to index
    %c2 = arith.constant 2 : index
    %21 = memref.load %arg3[%20, %c2] : memref<2x5xf32, #tpu.memory_space<smem>>
    %22 = vector.extract_strided_slice %0 {offsets = [0, 0, 0, 2], sizes = [1, 1, 1, 8], strides = [1, 1, 1, 1]} : vector<1x1x1x12xf32> to vector<1x1x1x8xf32>
    %23 = vector.shape_cast %22 : vector<1x1x1x8xf32> to vector<1x8xf32>
    %24 = vector.broadcast %21 : f32 to vector<1x8xf32>
    %25 = arith.mulf %24, %23 : vector<1x8xf32>
    %26 = arith.addf %19, %25 : vector<1x8xf32>
    %27 = arith.index_cast %arg1 : i32 to index
    %c3 = arith.constant 3 : index
    %28 = memref.load %arg3[%27, %c3] : memref<2x5xf32, #tpu.memory_space<smem>>
    %29 = vector.extract_strided_slice %0 {offsets = [0, 0, 0, 3], sizes = [1, 1, 1, 8], strides = [1, 1, 1, 1]} : vector<1x1x1x12xf32> to vector<1x1x1x8xf32>
    %30 = vector.shape_cast %29 : vector<1x1x1x8xf32> to vector<1x8xf32>
    %31 = vector.broadcast %28 : f32 to vector<1x8xf32>
    %32 = arith.mulf %31, %30 : vector<1x8xf32>
    %33 = arith.addf %26, %32 : vector<1x8xf32>
    %34 = arith.index_cast %arg1 : i32 to index
    %c4 = arith.constant 4 : index
    %35 = memref.load %arg3[%34, %c4] : memref<2x5xf32, #tpu.memory_space<smem>>
    %36 = vector.extract_strided_slice %0 {offsets = [0, 0, 0, 4], sizes = [1, 1, 1, 8], strides = [1, 1, 1, 1]} : vector<1x1x1x12xf32> to vector<1x1x1x8xf32>
    %37 = vector.shape_cast %36 : vector<1x1x1x8xf32> to vector<1x8xf32>
    %38 = vector.broadcast %35 : f32 to vector<1x8xf32>
    %39 = arith.mulf %38, %37 : vector<1x8xf32>
    %40 = arith.addf %33, %39 : vector<1x8xf32>
    %41 = arith.negf %40 : vector<1x8xf32>
    %42 = math.exp %41 : vector<1x8xf32>
    %cst_4 = arith.constant 1.000000e+00 : f32
    %43 = vector.broadcast %cst_4 : f32 to vector<1x8xf32>
    %44 = arith.addf %43, %42 : vector<1x8xf32>
    %45 = arith.divf %43, %44 : vector<1x8xf32>
    %c0_5 = arith.constant 0 : index
    %c0_6 = arith.constant 0 : index
    %c0_7 = arith.constant 0 : index
    %c0_8 = arith.constant 0 : index
    %46 = vector.load %arg6[%c0_5, %c0_6, %c0_7, %c0_8] : memref<1x1x8x256xf32, #tpu.memory_space<vmem>>, vector<1x1x8x256xf32>
    %47 = vector.shape_cast %45 : vector<1x8xf32> to vector<1x1x8x1xf32>
    %48 = vector.broadcast %47 : vector<1x1x8x1xf32> to vector<1x1x8x256xf32>
    %49 = arith.mulf %46, %48 : vector<1x1x8x256xf32>
    %c0_9 = arith.constant 0 : index
    %c0_10 = arith.constant 0 : index
    %c0_11 = arith.constant 0 : index
    %c0_12 = arith.constant 0 : index
    %50 = vector.load %arg7[%c0_9, %c0_10, %c0_11, %c0_12] : memref<1x1x8x256xf32, #tpu.memory_space<vmem>>, vector<1x1x8x256xf32>
    tpu.vector_store %arg7[%c0_9, %c0_10, %c0_11, %c0_12], %49 {strides = array<i32>} : memref<1x1x8x256xf32, #tpu.memory_space<vmem>>, vector<1x1x8x256xf32>,
    return
  }
  func.func @transform_0(%arg0: i32, %arg1: i32, %arg2: i32) -> (i32, i32) {
    %c0_i32 = arith.constant 0 : i32
    %c0_i32_0 = arith.constant 0 : i32
    %c0_i32_1 = arith.constant 0 : i32
    return %c0_i32, %c0_i32_0 : i32, i32
  }
  func.func @transform_1(%arg0: i32, %arg1: i32, %arg2: i32) -> i32 {
    %c0_i32 = arith.constant 0 : i32
    %c0_i32_0 = arith.constant 0 : i32
    return %c0_i32 : i32
  }
  func.func @transform_2(%arg0: i32, %arg1: i32, %arg2: i32) -> (i32, i32, i32, i32) {
    %c0_i32 = arith.constant 0 : i32
    %c0_i32_0 = arith.constant 0 : i32
    %c0_i32_1 = arith.constant 0 : i32
    return %arg0, %arg1, %c0_i32, %c0_i32_0 : i32, i32, i32, i32
  }
  func.func @transform_3(%arg0: i32, %arg1: i32, %arg2: i32) -> (i32, i32, i32, i32) {
    %c0_i32 = arith.constant 0 : i32
    %c0_i32_0 = arith.constant 0 : i32
    return %arg0, %arg1, %c0_i32, %arg2 : i32, i32, i32, i32
  }
  func.func @transform_4(%arg0: i32, %arg1: i32, %arg2: i32) -> (i32, i32, i32, i32) {
    %c0_i32 = arith.constant 0 : i32
    %c0_i32_0 = arith.constant 0 : i32
    return %arg0, %arg1, %c0_i32, %arg2 : i32, i32, i32, i32
  }
}

</mosaic_0001>

<bundles_post_ra>
// kernel: multi_scale_attention.2
= control target key start
LH: loop header
LB: loop body
LE: loop exit
PB: predicated region body
PF: predicated region fallthrough
CT: control target
= control target key end

     0   :  { %s311_s6 = smov 0   ;;  %s313_s7 = smov 0   ;;  %s348_s0 = inlined_call_operand.vmem [shape: f32[2,2,8,256], index: 0, kind: input, shape index: {}]   ;;  %s349_s1 = inlined_call_operand.vmem [shape: f32[2,2,8,1], index: 1, kind: output, shape index: {}]  }
   0x1   :  { %s315_s8 = smov 0  }
   0x2 LB: > { %s23_s9 = sadd.s32 1, %s294_s7  ;;  %p242_p0 = scmp.ge.s32.totalorder %s298_s8, 1  ;;  %s298_s8 = sphi %s315_s8, %s11_s8   ;;  %s294_s7 = sphi %s313_s7, %s351_s7   ;;  %s290_s6 = sphi %s311_s6, %s350_s6  }
   0x3   : > { %p25_p1 = scmp.ge.s32.totalorder %s23_s9, 2  ;;  %p106_p2 = scmp.lt.s32.totalorder %s298_s8, 3 }
   0x5   : > { %s353_s9 = smov (%p25_p1, %s23_s9), 0  ;;  %p107_p3 = pnand %p242_p0, %p106_p2 }
   0x6   : > { %p131_p4 = scmp.lt.s32.totalorder (!%p107_p3), %s290_s6, 1  ;;  %vm149_vm0 = vcmask (!%p107_p3), 7168   ;;  %v300_v3 = vmov (!%p107_p3), 0.0  }
   0x7   : > { %110 = sbr.rel (%p107_p3) target bundleno = 169 (0xa9), region = 24 }
   0xe   : > { %s355_s6 = smov (!%p131_p4, %s290_s6), 1 }
   0xf   : > { %s249_s10 = sshll.u32 %s355_s6, 5  ;;  %s250_s11 = sshll.u32 %s355_s6, 4 }
  0x10   : > { %s138_s14 = scalar_lea.vmem %s348_s0, %s249_s10  ;;  %s144_s17 = scalar_lea.vmem %s349_s1, %s250_s11 }
  0x11   : > { %v154_v0 = vld [vmem:[%s138_s14] sm:$0xff]  ;;  %v155_v1 = vld [vmem:[%s138_s14 + $0x8] sm:$0xff]  ;;  %v156_v2 = vld [vmem:[%s138_s14 + $0x10] sm:$0xff]  ;;  %150 = vst.msk [vmem:[%s144_s17] sm:$0xff] %vm149_vm0, %v300_v3 }
  0x12   : > { %151 = vst.msk [vmem:[%s144_s17 + $0x8] sm:$0xff] %vm149_vm0, %v300_v3  ;;  %v158_v4 = vadd.f32 %v155_v1, %v154_v0  ;;  %v157_v5 = vld [vmem:[%s138_s14 + $0x18] sm:$0xff] }
  0x13   : > { %v161_v6 = vadd.f32 %v157_v5, %v156_v2 }
  0x14   : > { %159 = vadd.xlane.f32.xlu0 %v158_v4 }
  0x18   : > { %162 = vadd.xlane.f32.xlu0 %v161_v6  ;;  %v152_v7 = vld [vmem:[%s144_s17] sm:$0xff] }
  0x19   : > { %v153_v10 = vld [vmem:[%s144_s17 + $0x8] sm:$0xff] }
  0xa1   : > { %v160_v8 = vpop.xlane.xlu0 %159 }
  0xa2   : > { %v164_v9 = vadd.f32 %v160_v8, %v152_v7 }
  0xa4   : > { %167 = vst.msk [vmem:[%s144_s17] sm:$0xff] %vm149_vm0, %v164_v9 }
  0xa5   : > { %v163_v11 = vpop.xlane.xlu0 %162 }
  0xa6   : > { %v165_v12 = vadd.f32 %v163_v11, %v153_v10 }
  0xa8   : > { %168 = vst.msk [vmem:[%s144_s17 + $0x8] sm:$0xff] %vm149_vm0, %v165_v12 }
  0xa9 PF: > { %s11_s8 = sadd.s32 1, %s298_s8   ;;  %s350_s6 = smov %s294_s7 }
  0xaa   : > { %p8_p5 = scmp.ge.s32.totalorder %s11_s8, 4   ;;  %s351_s7 = smov %s353_s9 }
  0xac   :  { %10 = sbr.rel (!%p8_p5) target bundleno = 2 (0x2), region = 58 }

// kernel: multi_scale_attention.3
= control target key start
LH: loop header
LB: loop body
LE: loop exit
PB: predicated region body
PF: predicated region fallthrough
CT: control target
= control target key end

     0   :  { %9 = vsyncpa [#allocation3], 0  ;;  %s848_s0 = inlined_call_operand.vmem [shape: f32[2,5], index: 0, kind: input, shape index: {}]   ;;  %s849_s1 = inlined_call_operand.vmem [shape: f32[2], index: 1, kind: input, shape index: {}]   ;;  %s850_s2 = inlined_call_operand.vmem [shape: f32[2,2,1,12], index: 2, kind: input, shape index: {}]   ;;  %s851_s3 = inlined_call_operand.vmem [shape: f32[2,2,8,256], index: 3, kind: input, shape index: {}, may-alias: {3,4}]   ;;  %s852_s4 = inlined_call_operand.vmem [shape: f32[2,2,8,256], index: 4, kind: output, shape index: {}, may-alias: {3,4}]  }
   0x1   :  { %10 = vsyncpa [#allocation5], 0  ;;  %s737_s15 = smov 0   ;;  %s739_s16 = smov 0  }
   0x2   :  { %s741_s17 = smov 0   ;;  %s743_s18 = smov 0  }
   0x3   :  { %s745_s19 = smov 0  }
   0x4 LB: > { %s539_s20 = sadd.s32 4294967295, %s704_s19   ;;  %s31_s21 = sadd.s32 1, %s696_s17  ;;  %s704_s19 = sphi %s745_s19, %s16_s19   ;;  %s700_s18 = sphi %s743_s18, %s864_s18   ;;  %s696_s17 = sphi %s741_s17, %s863_s17   ;;  %s692_s16 = sphi %s739_s16, %s862_s16   ;;  %s688_s15 = sphi %s737_s15, %s861_s15  }
   0x5   : > { %p33_p0 = scmp.ge.s32.totalorder %s31_s21, 2  ;;  %s35_s22 = sadd.s32 1, %s700_s18 }
   0x6   : > { %p541_p1 = scmp.ge.s32.totalorder %s704_s19, 1  ;;  %p170_p2 = scmp.lt.s32.totalorder %s704_s19, 5 }
   0x7   : > { %s866_s21 = smov (%p33_p0, %s31_s21), 0  ;;  %s868_s22 = smov (!%p33_p0, %s35_s22), %s700_s18 }
   0x8   : > { %p770_p3 = pnand %p541_p1, %p170_p2  ;;  %p37_p4 = scmp.ge.s32.totalorder %s868_s22, 2 }
   0x9   : > { %p774_p5 = scmp.eq.s32.totalorder %s539_s20, 0  ;;  %s183_s27 = sshll.u32 %s848_s0, 4  ;;  %s184_s27 = int_to_ptr.vmem [resolvable:$true] %s183_s27 }
   0xa   : > { %s856_s23 = scalar_select %p770_p3, 1, 0 }
   0xb   : > { %s857_s24 = scalar_select %p774_p5, 1, 0 }
   0xc   : > { %p567_p6 = pneg %p770_p3  ;;  %s870_s22 = smov (%p37_p4, %s868_s22), 0 }
   0xd   : > { %s194_s5 = sshll.u32 %s849_s1, 4  ;;  %s628_s6 = scalar_lea.vmem %s184_s27, 32  ;;  %s195_s5 = int_to_ptr.vmem [resolvable:$true] %s194_s5 }
   0xe   : > { %p787_p7 = pnand %p774_p5, %p567_p6  ;;  %p629_p8 = scmp.ne.s32.totalorder %s184_s27, %s628_s6 }
   0xf   : > { %p636_p12 = scmp.lt.s32.totalorder %s184_s27, %s184_s27  ;;  %p637_p13 = scmp.lt.s32.totalorder %s628_s6, %s628_s6 }
  0x10   : > { %p630_p9 = pneg %p787_p7 }
  0x11   : > { %p638_p0 = por %p637_p13, %p636_p12 }
  0x12   : > { %p631_p10 = pnand %p630_p9, %p629_p8 }
  0x14   : > { %p632_p11 = pneg %p631_p10 }
  0x16   : > { %p639_p1 = pnand %p638_p0, %p632_p11 }
  0x18   : > { %642 = shalt.err (!%p639_p1)
}
  0x19   : > { %s706_s7 = smov [#allocation2]   ;;  %s643_s8 = scalar_lea.vmem %s195_s5, 16 }
  0x1a   : > { %570 = dma.vmem_to_smem (!%p787_p7), %s184_s27, 32, %s706_s7, [#allocation3]  }
  0x1b   : > { %p644_p2 = scmp.ne.s32.totalorder %s195_s5, %s643_s8  ;;  %p651_p5 = scmp.lt.s32.totalorder %s195_s5, %s195_s5 }
  0x1c   : > { %p652_p3 = scmp.lt.s32.totalorder %s643_s8, %s643_s8 }
  0x1d   : > { %p646_p4 = pnand %p644_p2, %p630_p9 }
  0x1e   : > { %p653_p8 = por %p652_p3, %p651_p5 }
  0x1f   : > { %p647_p6 = pneg %p646_p4 }
  0x21   : > { %p654_p10 = pnand %p653_p8, %p647_p6 }
  0x23   : > { %657 = shalt.err (!%p654_p10)
}
  0x24   : > { %s707_s9 = smov [#allocation4]   ;;  %p859_p11 = scmp.ne.s32.totalorder %s856_s23, 0 }
  0x25   : > { %573 = dma.vmem_to_smem (!%p787_p7), %s195_s5, 16, %s707_s9, [#allocation5]  }
  0x26   : > { %234 = sbr.rel (%p859_p11) target bundleno = 334 (0x14e), region = 36  ;;  %p860_p12 = scmp.ne.s32.totalorder (!%p859_p11), %s857_s24, 0 }
  0x2d   : > { %679 = dma.done.wait (%p860_p12), [#allocation3], 32  }
  0x2e   : > { %681 = vsyncadd (%p860_p12), [#allocation3], 4294967264 }
  0x2f   : > { %683 = dma.done.wait (%p860_p12), [#allocation5], 16  }
  0x30   : > { %685 = vsyncadd (%p860_p12), [#allocation5], 4294967280 }
  0x31   : > { %244 = sfence }
  0x32   : > { %p288_p3 = scmp.lt.s32.totalorder %s692_s16, 1  ;;  %p290_p5 = scmp.lt.s32.totalorder %s688_s15, 1  ;;  %v376_v24 = vlaneseq }
  0x33   : > { %s555_s10 = sshll.u32 %s688_s15, 7  ;;  %s708_s7 = smov 127  }
  0x34   : > { %s872_s16 = smov (!%p288_p3, %s692_s16), 1  ;;  %s332_s13 = sadd.s32 1, %s555_s10  ;;  %v377_v25 = vshrl.u32 %v376_v24, 7 }
  0x35   : > { %s817_s11 = scalar_select %p290_p5, %s688_s15, 1 }
  0x36   : > { %s548_s12 = sshll.u32 %s872_s16, 1  ;;  %s333_s20 = sld [smem:[#allocation2 + %s332_s13]]  ;;  %v378_v26 = vsub.s32 0, %v377_v25 }
  0x37   : > { %s293_s14 = sadd.s32 %s548_s12, %s817_s11  ;;  %s350_s26 = sadd.s32 3, %s555_s10 }
  0x38   : > { %s294_s25 = scalar_lea.vmem %s850_s2, %s293_s14  ;;  %s351_s27 = sld [smem:[#allocation2 + %s350_s26]] }
  0x39   : > { %s341_s28 = sadd.s32 2, %s555_s10  ;;  %v323_v0 = vld [vmem:[%s294_s25] sm:$0x1]  ;;  %s359_s30 = sadd.s32 4, %s555_s10 }
  0x3a   : > { %s342_s29 = sld [smem:[#allocation2 + %s341_s28]]  ;;  %s709_s8 = smov 125  }
  0x3b   : > { %s360_s5 = sld [smem:[#allocation2 + %s359_s30]]  ;;  %s710_s9 = smov 126  }
  0x3c   : > { %v334_v1 = vstv %s333_s20  ;;  %s328_s6 = sld [smem:[#allocation2 + %s555_s10]]  ;;  %s711_s12 = smov 124  }
  0x3d   : > { %v335_v2 = vmul.f32 %v334_v1, %v323_v0  ;;  %s549_s10 = sshll.u32 %s817_s11, 1  ;;  %s550_s13 = sshll.u32 %s872_s16, 2 }
  0x3e   : > { %v352_v3 = vstv %s351_s27  ;;  %s305_s14 = sadd.s32 %s550_s13, %s549_s10  ;;  %s324_s20 = sld [smem:[#allocation4 + %s688_s15]] }
  0x3f   : > { %337 = vrot.lane.b32.xlu0 %v335_v2, %s708_s7  ;;  %v353_v4 = vmul.f32 %v352_v3, %v323_v0  ;;  %s551_s15 = sshll.u32 %s305_s14, 3 }
  0x40   : > { %v343_v5 = vstv %s342_s29  ;;  %s307_s23 = scalar_lea.vmem %s851_s3, %s551_s15  ;;  %s321_s26 = scalar_lea.vmem %s852_s4, %s551_s15 }
  0x41   : > { %355 = vrot.lane.b32.xlu1 %v353_v4, %s709_s8  ;;  %v344_v6 = vmul.f32 %v343_v5, %v323_v0  ;;  %v361_v7 = vstv %s360_s5  ;;  %v374_v29 = vld [vmem:[%s307_s23] sm:$0xff]  ;;  %v375_v30 = vld [vmem:[%s307_s23 + $0x8] sm:$0xff] }
  0x42   : > { %v362_v8 = vmul.f32 %v361_v7, %v323_v0  ;;  %v329_v9 = vstv %s328_s6 }
  0x43   : > { %346 = vrot.lane.b32.xlu0 %v344_v6, %s710_s9  ;;  %v330_v10 = vmul.f32 %v329_v9, %v323_v0 }
  0x44   : > { %v325_v11 = vstv %s324_s20 }
  0x45   : > { %364 = vrot.lane.b32.xlu1 %v362_v8, %s711_s12  ;;  %v331_v12 = vadd.f32 %v330_v10, %v325_v11 }
  0xb1   : > { %v338_v13 = vpop.permute.xlu0 %337 }
  0xb2   : > { %v340_v15 = vadd.f32 %v338_v13, %v331_v12 }
  0xb3   : > { %v356_v14 = vpop.permute.xlu1 %355 }
  0xb5   : > { %v347_v16 = vpop.permute.xlu0 %346 }
  0xb6   : > { %v349_v17 = vadd.f32 %v347_v16, %v340_v15 }
  0xb7   : > { %v365_v18 = vpop.permute.xlu1 %364 }
  0xb8   : > { %v358_v19 = vadd.f32 %v356_v14, %v349_v17 }
  0xba   : > { %v367_v20 = vadd.f32 %v365_v18, %v358_v19 }
  0xbc   : > { %v556_v21 = vmul.f32 -1.442695, %v367_v20 }
  0xbe   : > { %624 = vpow2.f32 %v556_v21 }
  0xc8   : > { %v625_v22 = vpop.eup %624 }
  0xc9   : > { %v371_v23 = vadd.f32 1.0, %v625_v22 }
  0xcb   : > { %626 = vrcp.f32 %v371_v23 }
  0xd5   : > { %v627_v27 = vpop.eup %626 }
  0xd6   : > { %v379_v28 = vrot.slane %v627_v27, %v378_v26 }
  0xd8   : > { %381 = vbcast.lane.b32.xlu0 %v379_v28, 256 }
 0x14a   : > { %v382_v31 = vpop.permute.xlu0 %381 }
 0x14b   : > { %v383_v32 = vmul.f32 %v382_v31, %v374_v29  ;;  %v384_v33 = vmul.f32 %v382_v31, %v375_v30 }
 0x14d   : > { %385 = vst [vmem:[%s321_s26] sm:$0xff] %v383_v32  ;;  %386 = vst [vmem:[%s321_s26 + $0x8] sm:$0xff] %v384_v33 }
 0x14e PF: > { %s16_s19 = sadd.s32 1, %s704_s19   ;;  %s861_s15 = smov %s696_s17 }
 0x14f   : > { %p13_p7 = scmp.ge.s32.totalorder %s16_s19, 6   ;;  %s862_s16 = smov %s700_s18 }
 0x150   : > { %s863_s17 = smov %s866_s21  ;;  %s864_s18 = smov %s870_s22 }
 0x151   :  { %15 = sbr.rel (!%p13_p7) target bundleno = 4 (0x4), region = 78 }
 0x158   :  { %425 = vsyncpa [#allocation3], 1 }
 0x159   :  { %427 = vsyncpa [#allocation3 + $0x1], 1 }
 0x15a   :  { %428 = vsyncpa [#allocation5], 1 }

</bundles_post_ra>
